<compile_context>
chip_gen: v5e
topology: v5e:2x2
jax: 0.10.0
libtpu: 0.0.40
codegen_flags: <defaults>
</compile_context>

<pallas_src>
import functools

import jax
import jax.numpy as jnp
from jax import lax
from jax.experimental import pallas as pl
from jax.experimental.pallas import tpu as pltpu


SMOOTH = 1e-6
LANE = 128
_MAX_ROWS = 2048          # per-tile row cap (amortizes per-step overhead)


def _query_vmem_capacity_bytes():
    # Import-time hardware query; fall back to the smallest per-core VMEM of
    # the supported generations (v7x: 64 MiB) if the query is unavailable.
    try:
        return int(pltpu.get_tpu_info().vmem_capacity_bytes)
    except Exception:
        return 64 * 1024 * 1024


_VMEM_CAP = _query_vmem_capacity_bytes()
# Leave ~25% headroom for compiler-internal scratch / pipelining:
# ~48 MiB on v7x, ~96 MiB on v5e/v6e.
_VMEM_LIMIT = int(min(_VMEM_CAP * 3 // 4, 100 * 1024 * 1024))


def _dice_kernel(pix_ref, preds_ref, masks_ref, out_ref, *,
                 hw, rows_per_tile, tiles_per_chunk, n_valid_tiles,
                 needs_mask, exp_dtype):
    """One (batch, chunk, spatial-tile) grid step.

    pix_ref  : SMEM (C,) int32 scalar-prefetched pixel values
    preds_ref: VMEM (1, C, R, 128) logits
    masks_ref: VMEM (1, 1, R, 128) int32 labels
    out_ref  : VMEM (1, 1, 3, C, 128) lane-partial [intersection, prob-sum,
               mask-sum], accumulated across the spatial ("arbitrary") axis.
    """
    t = pl.program_id(2)

    @pl.when(t == 0)
    def _():
        out_ref[...] = jnp.zeros_like(out_ref)

    n_classes = preds_ref.shape[1]

    def accumulate(valid):
        logits = preds_ref[0].astype(jnp.float32)          # (C, R, 128)
        mask = masks_ref[0, 0]                             # (R, 128) int32
        if valid is not None:
            # Edge tile only: out-of-bounds / padded tail data is undefined,
            # so zero the logits BEFORE exp (no Inf/NaN can survive).
            logits = jnp.where(valid[None], logits, 0.0)
            valid_f = valid.astype(jnp.float32)

        # Channel softmax: reductions over the leading (class) axis are pure
        # cross-slab VPU ops (no sublane shuffles).
        m = jnp.max(logits, axis=0, keepdims=True)         # (1, R, 128)
        x = logits - m
        if exp_dtype != jnp.float32:
            e = jnp.exp(x.astype(exp_dtype)).astype(jnp.float32)
        else:
            e = jnp.exp(x)                                 # (C, R, 128)  EUP
        z = jnp.sum(e, axis=0)                             # (R, 128)
        inv_z = pl.reciprocal(z, approx=True)              # EUP vrcp
        inv_z = inv_z * (2.0 - z * inv_z)                  # 1 Newton step -> f32 accurate

        inter_rows, pred_rows, mask_rows = [], [], []
        for c in range(n_classes):                         # static unroll
            # probs are never materialized as a (C, R, 128) temporary.
            pc = e[c] * inv_z                              # (R, 128)
            cm = (mask == pix_ref[c]).astype(jnp.float32)  # integer compare
            if valid is not None:
                pc = pc * valid_f
                cm = cm * valid_f
            inter_rows.append(jnp.sum(pc * cm, axis=0, keepdims=True))  # (1, 128)
            pred_rows.append(jnp.sum(pc, axis=0, keepdims=True))
            mask_rows.append(jnp.sum(cm, axis=0, keepdims=True))

        update = jnp.stack([jnp.concatenate(inter_rows, axis=0),
                            jnp.concatenate(pred_rows, axis=0),
                            jnp.concatenate(mask_rows, axis=0)],
                           axis=0)                         # (3, C, 128)
        # Single accumulator read-modify-write per grid step.
        out_ref[0, 0] += update

    if not needs_mask:
        accumulate(None)
    else:
        # Only the last *global* spatial tile can contain lane padding or
        # ragged out-of-bounds rows; interior tiles take the fast path.
        gt = pl.program_id(1) * tiles_per_chunk + t        # global tile index
        is_edge = gt == (n_valid_tiles - 1)

        @pl.when(jnp.logical_not(is_edge))
        def _():
            accumulate(None)

        @pl.when(is_edge)
        def _():
            row = lax.broadcasted_iota(jnp.int32, (rows_per_tile, LANE), 0)
            col = lax.broadcasted_iota(jnp.int32, (rows_per_tile, LANE), 1)
            base = (n_valid_tiles - 1) * rows_per_tile * LANE
            valid = (base + row * LANE + col) < hw         # (R, 128) bool
            accumulate(valid)


def _derive_rows_per_tile(n_rows, n_channels, max_rows_per_tile):
    """Pick the spatial tile height from a per-generation VMEM budget."""
    if max_rows_per_tile is None:
        # Per row of tile: double-buffered f32 logits + int32 mask inputs
        # (2*(C+1) lanes-rows) plus ~3C rows of in-kernel f32 temporaries.
        per_row_bytes = (5 * n_channels + 2) * LANE * 4
        budget = (_VMEM_LIMIT // 2) // per_row_bytes
        max_rows_per_tile = int(max(8, min(_MAX_ROWS, budget)) // 8 * 8)
    if n_rows <= max_rows_per_tile:
        return n_rows, 1                   # single full-dim tile (any row count)
    rows_per_tile = max(8, (max_rows_per_tile // 8) * 8)
    n_tiles = -(-n_rows // rows_per_tile)
    return rows_per_tile, n_tiles


@functools.partial(jax.jit, static_argnames=("max_rows_per_tile", "exp_dtype"))
def dice_loss_pallas(preds, masks, pixel_values, class_weights, *,
                     max_rows_per_tile=None, exp_dtype=jnp.float32):
    """preds: (B, C, H, W) logits; masks: (B, 1, H, W) integer labels."""
    B, C, H, W = preds.shape
    HW = H * W
    assert pixel_values.size == C

    # --- spatial re-layout: flatten H*W onto (rows, 128) lanes --------------
    n_rows = -(-HW // LANE)                    # ceil(HW / 128)
    lane_pad = n_rows * LANE - HW

    preds_f = preds.reshape(B, C, HW)
    masks_i = masks.reshape(B, 1, HW).astype(jnp.int32)
    if lane_pad:
        # Only pad when H*W is not lane-aligned (pad < 128 elements); the
        # padded tail is neutralized by the in-kernel edge-tile mask.
        preds_f = jnp.pad(preds_f, ((0, 0), (0, 0), (0, lane_pad)))
        masks_i = jnp.pad(masks_i, ((0, 0), (0, 0), (0, lane_pad)))
    preds_f = preds_f.reshape(B, C, n_rows, LANE)
    masks_i = masks_i.reshape(B, 1, n_rows, LANE)
    pix_i = pixel_values.astype(jnp.int32).reshape(C)

    rows_per_tile, n_row_tiles = _derive_rows_per_tile(n_rows, C, max_rows_per_tile)

    # Megacore (v7x): when the batch axis alone cannot feed both TensorCores,
    # expose a second "parallel" axis by splitting the spatial tiles in two.
    if B == 1 and n_row_tiles >= 2 and n_row_tiles % 2 == 0:
        n_chunks = 2
    else:
        n_chunks = 1
    tiles_per_chunk = n_row_tiles // n_chunks

    # Edge-tile masking is needed iff the tile grid over-covers H*W
    # (ragged last tile and/or lane padding).
    needs_mask = (n_row_tiles * rows_per_tile * LANE) != HW

    kernel = functools.partial(
        _dice_kernel, hw=HW, rows_per_tile=rows_per_tile,
        tiles_per_chunk=tiles_per_chunk, n_valid_tiles=n_row_tiles,
        needs_mask=needs_mask, exp_dtype=exp_dtype)

    partials = pl.pallas_call(
        kernel,
        out_shape=jax.ShapeDtypeStruct((B, n_chunks, 3, C, LANE), jnp.float32),
        grid_spec=pltpu.PrefetchScalarGridSpec(
            num_scalar_prefetch=1,                       # pixel values -> SMEM
            grid=(B, n_chunks, tiles_per_chunk),
            in_specs=[
                pl.BlockSpec(
                    (1, C, rows_per_tile, LANE),
                    lambda b, ch, t, pix: (b, 0, ch * tiles_per_chunk + t, 0)),
                pl.BlockSpec(
                    (1, 1, rows_per_tile, LANE),
                    lambda b, ch, t, pix: (b, 0, ch * tiles_per_chunk + t, 0)),
            ],
            out_specs=pl.BlockSpec(
                (1, 1, 3, C, LANE),
                lambda b, ch, t, pix: (b, ch, 0, 0, 0)),
        ),
        compiler_params=pltpu.CompilerParams(
            # batch & spatial-chunk axes are independent -> parallel
            # (megacore); the spatial tile axis accumulates -> arbitrary.
            dimension_semantics=("parallel", "parallel", "arbitrary"),
            vmem_limit_bytes=_VMEM_LIMIT,
        ),
    )(pix_i, preds_f, masks_i)

    # --- epilogue in JAX: 128->1 lane reduce, dice, weighting, mean ---------
    sums = jnp.sum(partials, axis=(0, 1, 4))              # (3, C)
    inter, pred_sum, mask_sum = sums[0], sums[1], sums[2]
    dice = (2.0 * inter + SMOOTH) / (pred_sum + mask_sum + SMOOTH)
    w = class_weights.astype(jnp.float32).reshape(C)
    return 1.0 - jnp.sum(dice * w) / C


def dice_loss_ref(preds, masks, pixel_values, class_weights):
    """Pure-JAX reference matching the PyTorch module semantics."""
    probs = jax.nn.softmax(preds.astype(jnp.float32), axis=1)
    m = masks[:, 0, :, :]
    losses = []
    for i in range(preds.shape[1]):
        p = probs[:, i, :, :]
        cm = (m == pixel_values[i]).astype(jnp.float32)
        inter = jnp.sum(p * cm)
        union = jnp.sum(p) + jnp.sum(cm)
        dice = (2.0 * inter + SMOOTH) / (union + SMOOTH)
        losses.append(dice * class_weights[i])
    return 1.0 - jnp.mean(jnp.stack(losses))


if __name__ == "__main__":
    # Mirrors DiceLoss(labels, labels_to_pixels) with default (ones) weights.
    labels = ["background", "road", "building", "water"]
    labels_to_pixels = {"background": 0, "road": 1, "building": 2, "water": 3}
    pixel_values = jnp.array([labels_to_pixels[l] for l in labels],
                             dtype=jnp.int32)
    class_weights = jnp.ones((len(labels),), dtype=jnp.float32)

    key = jax.random.PRNGKey(0)

    # case 1: lane-aligned, single tile (fast path only)
    # case 2: H*W % 128 != 0 -> lane padding, masked edge tile
    # case 3: tiny tiles -> multi-tile accumulation + ragged (non-dividing) grid
    # case 4: B == 1 -> parallel spatial chunk axis (megacore path)
    cases = [
        dict(B=2, C=4, H=16, W=16, max_rows=None),
        dict(B=2, C=4, H=20, W=20, max_rows=None),
        dict(B=2, C=4, H=48, W=48, max_rows=8),
        dict(B=1, C=4, H=64, W=64, max_rows=8),
    ]

    for cfg in cases:
        key, k_logits, k_mask = jax.random.split(key, 3)
        preds = jax.random.normal(
            k_logits, (cfg["B"], cfg["C"], cfg["H"], cfg["W"]),
            dtype=jnp.float32)
        masks = jax.random.randint(
            k_mask, (cfg["B"], 1, cfg["H"], cfg["W"]), 0, cfg["C"]
        ).astype(jnp.int32)

        loss = dice_loss_pallas(preds, masks, pixel_values, class_weights,
                                max_rows_per_tile=cfg["max_rows"])
        loss = jax.block_until_ready(loss)

        ref = dice_loss_ref(preds, masks, pixel_values, class_weights)
        assert jnp.allclose(loss, ref, atol=1e-5, rtol=1e-5), (cfg, loss, ref)

    print("KERNEL_OK")
</pallas_src>

<mosaic_0001>
module attributes {stable_mosaic.version = 11 : i64} {
  func.func @_dice_kernel(%arg0: i32, %arg1: i32, %arg2: i32, %arg3: memref<4xi32, #tpu.memory_space<smem>>, %arg4: memref<1x4x2x128xf32, #tpu.memory_space<vmem>>, %arg5: memref<1x1x2x128xi32, #tpu.memory_space<vmem>>, %arg6: memref<1x1x3x4x128xf32, #tpu.memory_space<vmem>>) attributes {dimension_semantics = [#tpu.dimension_semantics<parallel>, #tpu.dimension_semantics<parallel>, #tpu.dimension_semantics<arbitrary>], iteration_bounds = array<i64: 2, 1, 1>, scalar_prefetch = 1 : i64, scratch_operands = 0 : i64, tpu.core_type = #tpu.core_type<tc>, window_params = [{transform_indices = @transform_0, window_bounds = array<i64: 1, 4, 2, 128>}, {transform_indices = @transform_1, window_bounds = array<i64: 1, 1, 2, 128>}, {transform_indices = @transform_2, window_bounds = array<i64: 1, 1, 3, 4, 128>}]} {
    %c0_i32 = arith.constant 0 : i32
    %0 = arith.cmpi eq, %arg2, %c0_i32 : i32
    %1 = arith.extui %0 : i1 to i32
    %c0_i32_0 = arith.constant 0 : i32
    %2 = arith.cmpi ne, %1, %c0_i32_0 : i32
    scf.if %2 {
      %cst_33 = arith.constant 0.000000e+00 : f32
      %91 = vector.broadcast %cst_33 : f32 to vector<1x1x3x4x128xf32>
      %c0_34 = arith.constant 0 : index
      %c0_35 = arith.constant 0 : index
      %c0_36 = arith.constant 0 : index
      %c0_37 = arith.constant 0 : index
      %c0_38 = arith.constant 0 : index
      %92 = vector.load %arg6[%c0_34, %c0_35, %c0_36, %c0_37, %c0_38] : memref<1x1x3x4x128xf32, #tpu.memory_space<vmem>>, vector<1x1x3x4x128xf32>
      tpu.vector_store %arg6[%c0_34, %c0_35, %c0_36, %c0_37, %c0_38], %91 {strides = array<i32>} : memref<1x1x3x4x128xf32, #tpu.memory_space<vmem>>, vector<1x1x3x4x128xf32>,
    } else {
    }
    %c0 = arith.constant 0 : index
    %c0_1 = arith.constant 0 : index
    %c0_2 = arith.constant 0 : index
    %c0_3 = arith.constant 0 : index
    %3 = vector.load %arg4[%c0, %c0_1, %c0_2, %c0_3] : memref<1x4x2x128xf32, #tpu.memory_space<vmem>>, vector<1x4x2x128xf32>
    %4 = vector.shape_cast %3 : vector<1x4x2x128xf32> to vector<4x2x128xf32>
    %c0_4 = arith.constant 0 : index
    %c0_5 = arith.constant 0 : index
    %c0_6 = arith.constant 0 : index
    %c0_7 = arith.constant 0 : index
    %5 = vector.load %arg5[%c0_4, %c0_5, %c0_6, %c0_7] : memref<1x1x2x128xi32, #tpu.memory_space<vmem>>, vector<1x1x2x128xi32>
    %6 = vector.shape_cast %5 : vector<1x1x2x128xi32> to vector<2x128xi32>
    %cst = arith.constant dense<0xFF800000> : vector<2x128xf32>
    %7 = vector.multi_reduction <maximumf>, %4, %cst [0] : vector<4x2x128xf32> to vector<2x128xf32>
    %8 = vector.shape_cast %7 : vector<2x128xf32> to vector<1x2x128xf32>
    %9 = vector.broadcast %8 : vector<1x2x128xf32> to vector<4x2x128xf32>
    %10 = arith.subf %4, %9 : vector<4x2x128xf32>
    %11 = math.exp %10 : vector<4x2x128xf32>
    %cst_8 = arith.constant dense<0.000000e+00> : vector<2x128xf32>
    %12 = vector.multi_reduction <add>, %11, %cst_8 [0] : vector<4x2x128xf32> to vector<2x128xf32>
    %13 = tpu.reciprocal %12 {approx = true} : vector<2x128xf32> -> vector<2x128xf32>
    %14 = arith.mulf %12, %13 : vector<2x128xf32>
    %cst_9 = arith.constant 2.000000e+00 : f32
    %15 = vector.broadcast %cst_9 : f32 to vector<2x128xf32>
    %16 = arith.subf %15, %14 : vector<2x128xf32>
    %17 = arith.mulf %13, %16 : vector<2x128xf32>
    %18 = vector.extract_strided_slice %11 {offsets = [0, 0, 0], sizes = [1, 2, 128], strides = [1, 1, 1]} : vector<4x2x128xf32> to vector<1x2x128xf32>
    %19 = vector.shape_cast %18 : vector<1x2x128xf32> to vector<2x128xf32>
    %20 = arith.mulf %19, %17 : vector<2x128xf32>
    %c0_10 = arith.constant 0 : index
    %21 = memref.load %arg3[%c0_10] : memref<4xi32, #tpu.memory_space<smem>>
    %22 = vector.broadcast %21 : i32 to vector<2x128xi32>
    %23 = arith.cmpi eq, %6, %22 : vector<2x128xi32>
    %24 = arith.extui %23 : vector<2x128xi1> to vector<2x128xi32>
    %25 = arith.sitofp %24 : vector<2x128xi32> to vector<2x128xf32>
    %26 = arith.mulf %20, %25 : vector<2x128xf32>
    %cst_11 = arith.constant dense<0.000000e+00> : vector<128xf32>
    %27 = vector.multi_reduction <add>, %26, %cst_11 [0] : vector<2x128xf32> to vector<128xf32>
    %28 = vector.shape_cast %27 : vector<128xf32> to vector<1x128xf32>
    %cst_12 = arith.constant dense<0.000000e+00> : vector<128xf32>
    %29 = vector.multi_reduction <add>, %20, %cst_12 [0] : vector<2x128xf32> to vector<128xf32>
    %30 = vector.shape_cast %29 : vector<128xf32> to vector<1x128xf32>
    %cst_13 = arith.constant dense<0.000000e+00> : vector<128xf32>
    %31 = vector.multi_reduction <add>, %25, %cst_13 [0] : vector<2x128xf32> to vector<128xf32>
    %32 = vector.shape_cast %31 : vector<128xf32> to vector<1x128xf32>
    %33 = vector.extract_strided_slice %11 {offsets = [1, 0, 0], sizes = [1, 2, 128], strides = [1, 1, 1]} : vector<4x2x128xf32> to vector<1x2x128xf32>
    %34 = vector.shape_cast %33 : vector<1x2x128xf32> to vector<2x128xf32>
    %35 = arith.mulf %34, %17 : vector<2x128xf32>
    %c1 = arith.constant 1 : index
    %36 = memref.load %arg3[%c1] : memref<4xi32, #tpu.memory_space<smem>>
    %37 = vector.broadcast %36 : i32 to vector<2x128xi32>
    %38 = arith.cmpi eq, %6, %37 : vector<2x128xi32>
    %39 = arith.extui %38 : vector<2x128xi1> to vector<2x128xi32>
    %40 = arith.sitofp %39 : vector<2x128xi32> to vector<2x128xf32>
    %41 = arith.mulf %35, %40 : vector<2x128xf32>
    %cst_14 = arith.constant dense<0.000000e+00> : vector<128xf32>
    %42 = vector.multi_reduction <add>, %41, %cst_14 [0] : vector<2x128xf32> to vector<128xf32>
    %43 = vector.shape_cast %42 : vector<128xf32> to vector<1x128xf32>
    %cst_15 = arith.constant dense<0.000000e+00> : vector<128xf32>
    %44 = vector.multi_reduction <add>, %35, %cst_15 [0] : vector<2x128xf32> to vector<128xf32>
    %45 = vector.shape_cast %44 : vector<128xf32> to vector<1x128xf32>
    %cst_16 = arith.constant dense<0.000000e+00> : vector<128xf32>
    %46 = vector.multi_reduction <add>, %40, %cst_16 [0] : vector<2x128xf32> to vector<128xf32>
    %47 = vector.shape_cast %46 : vector<128xf32> to vector<1x128xf32>
    %48 = vector.extract_strided_slice %11 {offsets = [2, 0, 0], sizes = [1, 2, 128], strides = [1, 1, 1]} : vector<4x2x128xf32> to vector<1x2x128xf32>
    %49 = vector.shape_cast %48 : vector<1x2x128xf32> to vector<2x128xf32>
    %50 = arith.mulf %49, %17 : vector<2x128xf32>
    %c2 = arith.constant 2 : index
    %51 = memref.load %arg3[%c2] : memref<4xi32, #tpu.memory_space<smem>>
    %52 = vector.broadcast %51 : i32 to vector<2x128xi32>
    %53 = arith.cmpi eq, %6, %52 : vector<2x128xi32>
    %54 = arith.extui %53 : vector<2x128xi1> to vector<2x128xi32>
    %55 = arith.sitofp %54 : vector<2x128xi32> to vector<2x128xf32>
    %56 = arith.mulf %50, %55 : vector<2x128xf32>
    %cst_17 = arith.constant dense<0.000000e+00> : vector<128xf32>
    %57 = vector.multi_reduction <add>, %56, %cst_17 [0] : vector<2x128xf32> to vector<128xf32>
    %58 = vector.shape_cast %57 : vector<128xf32> to vector<1x128xf32>
    %cst_18 = arith.constant dense<0.000000e+00> : vector<128xf32>
    %59 = vector.multi_reduction <add>, %50, %cst_18 [0] : vector<2x128xf32> to vector<128xf32>
    %60 = vector.shape_cast %59 : vector<128xf32> to vector<1x128xf32>
    %cst_19 = arith.constant dense<0.000000e+00> : vector<128xf32>
    %61 = vector.multi_reduction <add>, %55, %cst_19 [0] : vector<2x128xf32> to vector<128xf32>
    %62 = vector.shape_cast %61 : vector<128xf32> to vector<1x128xf32>
    %63 = vector.extract_strided_slice %11 {offsets = [3, 0, 0], sizes = [1, 2, 128], strides = [1, 1, 1]} : vector<4x2x128xf32> to vector<1x2x128xf32>
    %64 = vector.shape_cast %63 : vector<1x2x128xf32> to vector<2x128xf32>
    %65 = arith.mulf %64, %17 : vector<2x128xf32>
    %c3 = arith.constant 3 : index
    %66 = memref.load %arg3[%c3] : memref<4xi32, #tpu.memory_space<smem>>
    %67 = vector.broadcast %66 : i32 to vector<2x128xi32>
    %68 = arith.cmpi eq, %6, %67 : vector<2x128xi32>
    %69 = arith.extui %68 : vector<2x128xi1> to vector<2x128xi32>
    %70 = arith.sitofp %69 : vector<2x128xi32> to vector<2x128xf32>
    %71 = arith.mulf %65, %70 : vector<2x128xf32>
    %cst_20 = arith.constant dense<0.000000e+00> : vector<128xf32>
    %72 = vector.multi_reduction <add>, %71, %cst_20 [0] : vector<2x128xf32> to vector<128xf32>
    %73 = vector.shape_cast %72 : vector<128xf32> to vector<1x128xf32>
    %cst_21 = arith.constant dense<0.000000e+00> : vector<128xf32>
    %74 = vector.multi_reduction <add>, %65, %cst_21 [0] : vector<2x128xf32> to vector<128xf32>
    %75 = vector.shape_cast %74 : vector<128xf32> to vector<1x128xf32>
    %cst_22 = arith.constant dense<0.000000e+00> : vector<128xf32>
    %76 = vector.multi_reduction <add>, %70, %cst_22 [0] : vector<2x128xf32> to vector<128xf32>
    %77 = vector.shape_cast %76 : vector<128xf32> to vector<1x128xf32>
    %78 = tpu.concatenate %28, %43, %58, %73 in 0 : vector<1x128xf32>, vector<1x128xf32>, vector<1x128xf32>, vector<1x128xf32> -> vector<4x128xf32>
    %79 = tpu.concatenate %30, %45, %60, %75 in 0 : vector<1x128xf32>, vector<1x128xf32>, vector<1x128xf32>, vector<1x128xf32> -> vector<4x128xf32>
    %80 = tpu.concatenate %32, %47, %62, %77 in 0 : vector<1x128xf32>, vector<1x128xf32>, vector<1x128xf32>, vector<1x128xf32> -> vector<4x128xf32>
    %81 = vector.shape_cast %78 : vector<4x128xf32> to vector<1x4x128xf32>
    %82 = vector.shape_cast %79 : vector<4x128xf32> to vector<1x4x128xf32>
    %83 = vector.shape_cast %80 : vector<4x128xf32> to vector<1x4x128xf32>
    %84 = tpu.concatenate %81, %82, %83 in 0 : vector<1x4x128xf32>, vector<1x4x128xf32>, vector<1x4x128xf32> -> vector<3x4x128xf32>
    %c0_23 = arith.constant 0 : index
    %c0_24 = arith.constant 0 : index
    %c0_25 = arith.constant 0 : index
    %c0_26 = arith.constant 0 : index
    %c0_27 = arith.constant 0 : index
    %85 = vector.load %arg6[%c0_23, %c0_24, %c0_25, %c0_26, %c0_27] : memref<1x1x3x4x128xf32, #tpu.memory_space<vmem>>, vector<1x1x3x4x128xf32>
    %86 = vector.shape_cast %85 : vector<1x1x3x4x128xf32> to vector<3x4x128xf32>
    %87 = arith.addf %86, %84 : vector<3x4x128xf32>
    %c0_28 = arith.constant 0 : index
    %c0_29 = arith.constant 0 : index
    %c0_30 = arith.constant 0 : index
    %c0_31 = arith.constant 0 : index
    %c0_32 = arith.constant 0 : index
    %88 = vector.load %arg6[%c0_28, %c0_29, %c0_30, %c0_31, %c0_32] : memref<1x1x3x4x128xf32, #tpu.memory_space<vmem>>, vector<1x1x3x4x128xf32>
    %89 = vector.shape_cast %88 : vector<1x1x3x4x128xf32> to vector<3x4x128xf32>
    %90 = vector.shape_cast %87 : vector<3x4x128xf32> to vector<1x1x3x4x128xf32>
    tpu.vector_store %arg6[%c0_28, %c0_29, %c0_30, %c0_31, %c0_32], %90 {strides = array<i32>} : memref<1x1x3x4x128xf32, #tpu.memory_space<vmem>>, vector<1x1x3x4x128xf32>,
    return
  }
  func.func @transform_0(%arg0: i32, %arg1: i32, %arg2: i32, %arg3: memref<4xi32, #tpu.memory_space<smem>>) -> (i32, i32, i32, i32) {
    %c1_i32 = arith.constant 1 : i32
    %0 = arith.muli %arg1, %c1_i32 : i32
    %1 = arith.addi %0, %arg2 : i32
    %c0_i32 = arith.constant 0 : i32
    %c0_i32_0 = arith.constant 0 : i32
    %c0_i32_1 = arith.constant 0 : i32
    return %arg0, %c0_i32, %1, %c0_i32_0 : i32, i32, i32, i32
  }
  func.func @transform_1(%arg0: i32, %arg1: i32, %arg2: i32, %arg3: memref<4xi32, #tpu.memory_space<smem>>) -> (i32, i32, i32, i32) {
    %c1_i32 = arith.constant 1 : i32
    %0 = arith.muli %arg1, %c1_i32 : i32
    %1 = arith.addi %0, %arg2 : i32
    %c0_i32 = arith.constant 0 : i32
    %c0_i32_0 = arith.constant 0 : i32
    %c0_i32_1 = arith.constant 0 : i32
    return %arg0, %c0_i32, %1, %c0_i32_0 : i32, i32, i32, i32
  }
  func.func @transform_2(%arg0: i32, %arg1: i32, %arg2: i32, %arg3: memref<4xi32, #tpu.memory_space<smem>>) -> (i32, i32, i32, i32, i32) {
    %c0_i32 = arith.constant 0 : i32
    %c0_i32_0 = arith.constant 0 : i32
    %c0_i32_1 = arith.constant 0 : i32
    %c0_i32_2 = arith.constant 0 : i32
    return %arg0, %arg1, %c0_i32, %c0_i32_0, %c0_i32_1 : i32, i32, i32, i32, i32
  }
}

</mosaic_0001>

<bundles_post_ra>
// kernel: dice_loss_pallas.1
= control target key start
LH: loop header
LB: loop body
LE: loop exit
PB: predicated region body
PF: predicated region fallthrough
CT: control target
= control target key end

     0   :  { %s611_s15 = smov [#allocation3]   ;;  %s733_s0 = inlined_call_operand.vmem [shape: s32[4], index: 0, kind: input, shape index: {}]   ;;  %s734_s1 = inlined_call_operand.vmem [shape: f32[2,4,2,128], index: 1, kind: input, shape index: {}]   ;;  %s735_s2 = inlined_call_operand.vmem [shape: s32[2,1,2,128], index: 2, kind: input, shape index: {}]   ;;  %s736_s3 = inlined_call_operand.vmem [shape: f32[2,1,3,4,128], index: 3, kind: output, shape index: {}]  }
   0x1   :  { %s9_s14 = sshll.u32 %s733_s0, 4  ;;  %s10_s14 = int_to_ptr.vmem [resolvable:$true] %s9_s14 }
   0x2   :  { %12 = dma.vmem_to_smem %s10_s14, 16, %s611_s15, [#allocation2] }
   0x3   :  { %597 = dma.done.wait [#allocation2], 16 }
   0x4   :  { %598 = vsyncadd [#allocation2], 4294967280 }
   0x5   :  { %15 = sfence }
   0x6   :  { %s636_s16 = smov 0   ;;  %s638_s17 = smov 0  }
   0x7   :  { %s640_s18 = smov 0  }
   0x8 LB: > { %s40_s0 = sadd.s32 1, %s605_s17  ;;  %p521_p0 = scmp.ge.s32.totalorder %s609_s18, 1  ;;  %s609_s18 = sphi %s640_s18, %s21_s18   ;;  %s605_s17 = sphi %s638_s17, %s738_s17   ;;  %s601_s16 = sphi %s636_s16, %s737_s16  }
   0x9   : > { %p42_p1 = scmp.ge.s32.totalorder %s40_s0, 2  ;;  %p169_p2 = scmp.lt.s32.totalorder %s609_s18, 3 }
   0xb   : > { %s740_s0 = smov (%p42_p1, %s40_s0), 0  ;;  %p170_p3 = pnand %p521_p0, %p169_p2 }
   0xc   : > { %p208_p4 = scmp.lt.s32.totalorder (!%p170_p3), %s601_s16, 1  ;;  %s654_s19 = sld [smem:[#allocation3]] (!%p170_p3) }
   0xd   : > { %173 = sbr.rel (%p170_p3) target bundleno = 84 (0x54), region = 28  ;;  %s656_s20 = sld [smem:[#allocation3 + $0x1]] (!%p170_p3) }
   0xe   : > { %s658_s21 = sld [smem:[#allocation3 + $0x2]] (!%p170_p3) }
   0xf   : > { %s531_s7 = sld [smem:[#allocation3 + $0x3]] (!%p170_p3) }
  0x12   : > { %s742_s16 = smov (!%p208_p4, %s601_s16), 1  ;;  %vm247_vm0 = vcmask 1041408   ;;  %v612_v3 = vmov 0.0   ;;  %v280_v13 = vstv %s654_s19  ;;  %vm390_vm5 = vcmask 1040384  }
  0x13   : > { %s535_s22 = sshll.u32 %s742_s16, 3  ;;  %s536_s23 = smul.u32 12, %s742_s16  ;;  %v308_v14 = vstv %s656_s20  ;;  %vm393_vm6 = vcmask 1042432  }
  0x14   : > { %s215_s26 = scalar_lea.vmem %s734_s1, %s535_s22  ;;  %s524_s27 = sshll.u32 %s742_s16, 1  ;;  %v336_v19 = vstv %s658_s21 }
  0x15   : > { %s666_s30 = scalar_lea.vmem %s736_s3, %s536_s23  ;;  %v242_v0 = vld [vmem:[%s215_s26] sm:$0x3]  ;;  %v243_v1 = vld [vmem:[%s215_s26 + $0x2] sm:$0x3]  ;;  %v244_v2 = vld [vmem:[%s215_s26 + $0x4] sm:$0x3]  ;;  %s224_s6 = scalar_lea.vmem %s735_s2, %s524_s27  ;;  %v364_v27 = vstv %s531_s7 }
  0x16   : > { %239 = vst [vmem:[%s666_s30] sm:$0xf] %v612_v3  ;;  %v245_v4 = vld [vmem:[%s215_s26 + $0x6] sm:$0x3]  ;;  %v248_v5 = vsel %vm247_vm0, %v242_v0, -inf  ;;  %v249_v6 = vsel %vm247_vm0, %v243_v1, -inf  ;;  %v250_v7 = vsel %vm247_vm0, %v244_v2, -inf }
  0x17   : > { %240 = vst [vmem:[%s666_s30 + $0x4] sm:$0xf] %v612_v3  ;;  %v251_v8 = vsel %vm247_vm0, %v245_v4, -inf  ;;  %v252_v9 = vmax.f32 %v248_v5, %v249_v6  ;;  %v246_v11 = vld [vmem:[%s224_s6] sm:$0x3] }
  0x18   : > { %241 = vst [vmem:[%s666_s30 + $0x8] sm:$0xf] %v612_v3  ;;  %v253_v10 = vmax.f32 %v250_v7, %v251_v8  ;;  %vm281_vm1 = vcmp.eq.s32.totalorder %v246_v11, %v280_v13  ;;  %vm309_vm2 = vcmp.eq.s32.totalorder %v246_v11, %v308_v14  ;;  %vm337_vm3 = vcmp.eq.s32.totalorder %v246_v11, %v336_v19 }
  0x19   : > { %v681_v24 = vsel %vm281_vm1, 1.0, %v612_v3  ;;  %v683_v25 = vsel %vm309_vm2, 1.0, %v612_v3  ;;  %v685_v26 = vsel %vm337_vm3, 1.0, %v612_v3  ;;  %vm365_vm4 = vcmp.eq.s32.totalorder %v246_v11, %v364_v27 }
  0x1a   : > { %v254_v12 = vmax.f32 %v252_v9, %v253_v10  ;;  %v299_v28 = vsel %vm247_vm0, %v681_v24, 0.0  ;;  %v327_v29 = vsel %vm247_vm0, %v683_v25, 0.0  ;;  %v532_v30 = vsel %vm365_vm4, 1.0, %v612_v3 }
  0x1b   : > { %v300_v31 = vrot.slane %v299_v28, 4  ;;  %v328_v32 = vrot.slane %v327_v29, 4  ;;  %v355_v33 = vsel %vm247_vm0, %v685_v26, 0.0  ;;  %v383_v34 = vsel %vm247_vm0, %v532_v30, 0.0 }
  0x1c   : > { %v255_v15 = vsub.f32 %v242_v0, %v254_v12  ;;  %v256_v16 = vsub.f32 %v243_v1, %v254_v12  ;;  %v257_v17 = vsub.f32 %v244_v2, %v254_v12  ;;  %v258_v18 = vsub.f32 %v245_v4, %v254_v12 }
  0x1d   : > { %v301_v35 = vadd.f32 %v300_v31, %v299_v28  ;;  %v329_v36 = vadd.f32 %v328_v32, %v327_v29  ;;  %v356_v37 = vrot.slane %v355_v33, 4  ;;  %v384_v38 = vrot.slane %v383_v34, 4 }
  0x1e   : > { %v259_v20 = vmul.f32 1.442695, %v255_v15  ;;  %v261_v21 = vmul.f32 1.442695, %v256_v16  ;;  %v263_v22 = vmul.f32 1.442695, %v257_v17 }
  0x1f   : > { %v265_v23 = vmul.f32 1.442695, %v258_v18  ;;  %v302_v40 = vrot.slane %v301_v35, 2  ;;  %v330_v41 = vrot.slane %v329_v36, 2  ;;  %v357_v42 = vadd.f32 %v356_v37, %v355_v33  ;;  %v403_v6 = vld [vmem:[%s666_s30 + $0x8] sm:$0xf] }
  0x20   : > { %563 = vpow2.f32 %v259_v20  ;;  %v385_v43 = vadd.f32 %v384_v38, %v383_v34 }
  0x21   : > { %565 = vpow2.f32 %v261_v21  ;;  %v303_v48 = vadd.f32 %v302_v40, %v301_v35  ;;  %v331_v49 = vadd.f32 %v330_v41, %v329_v36  ;;  %v358_v50 = vrot.slane %v357_v42, 2 }
  0x22   : > { %567 = vpow2.f32 %v263_v22  ;;  %v386_v54 = vrot.slane %v385_v43, 2 }
  0x23   : > { %569 = vpow2.f32 %v265_v23  ;;  %v304_v56 = vrot.slane %v303_v48, 1  ;;  %v332_v57 = vrot.slane %v331_v49, 1  ;;  %v359_v58 = vadd.f32 %v358_v50, %v357_v42 }
  0x24   : > { %v387_v60 = vadd.f32 %v386_v54, %v385_v43 }
  0x25   : > { %v305_v61 = vadd.f32 %v304_v56, %v303_v48  ;;  %v333_v62 = vadd.f32 %v332_v57, %v331_v49  ;;  %v360_v63 = vrot.slane %v359_v58, 1 }
  0x26   : > { %v564_v39 = vpop.eup %563  ;;  %v388_v1 = vrot.slane %v387_v60, 1 }
  0x27   : > { %v566_v44 = vpop.eup %565  ;;  %v267_v45 = vsel %vm247_vm0, %v564_v39, 0.0  ;;  %v361_v2 = vadd.f32 %v360_v63, %v359_v58  ;;  %v398_v3 = vsel %vm390_vm5, %v305_v61, %v333_v62 }
  0x28   : > { %v568_v46 = vpop.eup %567  ;;  %v268_v47 = vsel %vm247_vm0, %v566_v44, 0.0  ;;  %v389_v4 = vadd.f32 %v388_v1, %v387_v60 }
  0x29   : > { %v570_v51 = vpop.eup %569  ;;  %v269_v52 = vadd.f32 %v268_v47, %v267_v45  ;;  %v270_v53 = vsel %vm247_vm0, %v568_v46, 0.0  ;;  %v399_v5 = vsel %vm247_vm0, %v398_v3, %v361_v2 }
  0x2a   : > { %v272_v55 = vsel %vm247_vm0, %v570_v51, 0.0  ;;  %v400_v7 = vsel %vm393_vm6, %v399_v5, %v389_v4 }
  0x2b   : > { %v271_v59 = vadd.f32 %v270_v53, %v269_v52  ;;  %v406_v8 = vadd.f32 %v403_v6, %v400_v7 }
  0x2d   : > { %v273_v0 = vadd.f32 %v272_v55, %v271_v59  ;;  %409 = vst [vmem:[%s666_s30 + $0x8] sm:$0xf] %v406_v8 }
  0x2f   : > { %571 = vrcp.f32 %v273_v0 }
  0x35   : > { %v572_v9 = vpop.eup %571 }
  0x36   : > { %v275_v10 = vmul.f32 %v572_v9, %v273_v0 }
  0x38   : > { %v276_v11 = vsub.f32 2.0, %v275_v10 }
  0x3a   : > { %v277_v12 = vmul.f32 %v572_v9, %v276_v11 }
  0x3c   : > { %v278_v13 = vmul.f32 %v564_v39, %v277_v12  ;;  %v306_v14 = vmul.f32 %v566_v44, %v277_v12  ;;  %v334_v15 = vmul.f32 %v568_v46, %v277_v12  ;;  %v362_v16 = vmul.f32 %v570_v51, %v277_v12 }
  0x3e   : > { %v284_v17 = vmul.f32 %v681_v24, %v278_v13  ;;  %v312_v18 = vmul.f32 %v683_v25, %v306_v14  ;;  %v340_v19 = vmul.f32 %v685_v26, %v334_v15  ;;  %v368_v20 = vmul.f32 %v532_v30, %v362_v16 }
  0x3f   : > { %v292_v21 = vsel %vm247_vm0, %v278_v13, 0.0  ;;  %v320_v22 = vsel %vm247_vm0, %v306_v14, 0.0  ;;  %v348_v23 = vsel %vm247_vm0, %v334_v15, 0.0  ;;  %v376_v27 = vsel %vm247_vm0, %v362_v16, 0.0  ;;  %v401_v14 = vld [vmem:[%s666_s30] sm:$0xf] }
  0x40   : > { %v285_v28 = vsel %vm247_vm0, %v284_v17, 0.0  ;;  %v313_v29 = vsel %vm247_vm0, %v312_v18, 0.0  ;;  %v341_v31 = vsel %vm247_vm0, %v340_v19, 0.0  ;;  %v369_v24 = vsel %vm247_vm0, %v368_v20, 0.0  ;;  %v402_v17 = vld [vmem:[%s666_s30 + $0x4] sm:$0xf] }
  0x41   : > { %v286_v25 = vrot.slane %v285_v28, 4  ;;  %v314_v32 = vrot.slane %v313_v29, 4  ;;  %v342_v26 = vrot.slane %v341_v31, 4  ;;  %v370_v30 = vrot.slane %v369_v24, 4 }
  0x42   : > { %v293_v33 = vrot.slane %v292_v21, 4  ;;  %v321_v34 = vrot.slane %v320_v22, 4  ;;  %v349_v35 = vrot.slane %v348_v23, 4  ;;  %v377_v36 = vrot.slane %v376_v27, 4 }
  0x43   : > { %v287_v37 = vadd.f32 %v286_v25, %v285_v28  ;;  %v315_v38 = vadd.f32 %v314_v32, %v313_v29  ;;  %v343_v39 = vadd.f32 %v342_v26, %v341_v31  ;;  %v371_v40 = vadd.f32 %v370_v30, %v369_v24 }
  0x44   : > { %v294_v41 = vadd.f32 %v293_v33, %v292_v21  ;;  %v322_v42 = vadd.f32 %v321_v34, %v320_v22  ;;  %v350_v43 = vadd.f32 %v349_v35, %v348_v23  ;;  %v378_v44 = vadd.f32 %v377_v36, %v376_v27 }
  0x45   : > { %v288_v45 = vrot.slane %v287_v37, 2  ;;  %v316_v46 = vrot.slane %v315_v38, 2  ;;  %v344_v47 = vrot.slane %v343_v39, 2  ;;  %v372_v48 = vrot.slane %v371_v40, 2 }
  0x46   : > { %v295_v49 = vrot.slane %v294_v41, 2  ;;  %v323_v50 = vrot.slane %v322_v42, 2  ;;  %v351_v51 = vrot.slane %v350_v43, 2  ;;  %v379_v52 = vrot.slane %v378_v44, 2 }
  0x47   : > { %v289_v53 = vadd.f32 %v288_v45, %v287_v37  ;;  %v317_v54 = vadd.f32 %v316_v46, %v315_v38  ;;  %v345_v55 = vadd.f32 %v344_v47, %v343_v39  ;;  %v373_v56 = vadd.f32 %v372_v48, %v371_v40 }
  0x48   : > { %v296_v57 = vadd.f32 %v295_v49, %v294_v41  ;;  %v324_v58 = vadd.f32 %v323_v50, %v322_v42  ;;  %v352_v59 = vadd.f32 %v351_v51, %v350_v43  ;;  %v380_v60 = vadd.f32 %v379_v52, %v378_v44 }
  0x49   : > { %v290_v61 = vrot.slane %v289_v53, 1  ;;  %v318_v62 = vrot.slane %v317_v54, 1  ;;  %v346_v63 = vrot.slane %v345_v55, 1  ;;  %v374_v0 = vrot.slane %v373_v56, 1 }
  0x4a   : > { %v297_v1 = vrot.slane %v296_v57, 1  ;;  %v325_v2 = vrot.slane %v324_v58, 1  ;;  %v353_v3 = vrot.slane %v352_v59, 1  ;;  %v381_v4 = vrot.slane %v380_v60, 1 }
  0x4b   : > { %v291_v5 = vadd.f32 %v290_v61, %v289_v53  ;;  %v319_v6 = vadd.f32 %v318_v62, %v317_v54  ;;  %v347_v7 = vadd.f32 %v346_v63, %v345_v55  ;;  %v375_v8 = vadd.f32 %v374_v0, %v373_v56 }
  0x4c   : > { %v298_v9 = vadd.f32 %v297_v1, %v296_v57  ;;  %v326_v10 = vadd.f32 %v325_v2, %v324_v58  ;;  %v354_v11 = vadd.f32 %v353_v3, %v352_v59  ;;  %v382_v12 = vadd.f32 %v381_v4, %v380_v60 }
  0x4d   : > { %v391_v13 = vsel %vm390_vm5, %v291_v5, %v319_v6 }
  0x4e   : > { %v392_v15 = vsel %vm247_vm0, %v391_v13, %v347_v7  ;;  %v395_v16 = vsel %vm390_vm5, %v298_v9, %v326_v10 }
  0x4f   : > { %v394_v18 = vsel %vm393_vm6, %v392_v15, %v375_v8  ;;  %v396_v19 = vsel %vm247_vm0, %v395_v16, %v354_v11 }
  0x50   : > { %v404_v20 = vadd.f32 %v401_v14, %v394_v18  ;;  %v397_v21 = vsel %vm393_vm6, %v396_v19, %v382_v12 }
  0x51   : > { %v405_v22 = vadd.f32 %v402_v17, %v397_v21 }
  0x52   : > { %407 = vst [vmem:[%s666_s30] sm:$0xf] %v404_v20 }
  0x53   : > { %408 = vst [vmem:[%s666_s30 + $0x4] sm:$0xf] %v405_v22 }
  0x54 PF: > { %s21_s18 = sadd.s32 1, %s609_s18   ;;  %s737_s16 = smov %s605_s17 }
  0x55   : > { %p18_p5 = scmp.ge.s32.totalorder %s21_s18, 4   ;;  %s738_s17 = smov %s740_s0 }
  0x57   :  { %20 = sbr.rel (!%p18_p5) target bundleno = 8 (0x8), region = 65 }

</bundles_post_ra>
